<compile_context>
chip_gen: v6e
topology: v6e:2x2x1
jax: 0.10.0
libtpu: 0.0.40
codegen_flags: <defaults>
</compile_context>

<pallas_src>
import functools

import jax
import jax.numpy as jnp
from jax import lax
from jax.experimental import pallas as pl
from jax.experimental.pallas import tpu as pltpu


def _masked_ce_kernel(logits_ref, mw_ref, mwt_ref, numer_ref, denom_ref,
                      numer_acc, denom_acc, *, total_rows, block_rows, inner_steps):
    p = pl.program_id(0)   # parallel shard (TensorCore)
    i = pl.program_id(1)   # reduction step within the shard

    @pl.when(i == 0)
    def _():
        numer_acc[...] = jnp.zeros_like(numer_acc)
        denom_acc[...] = jnp.zeros_like(denom_acc)

    x_nat = logits_ref[...]                       # (TB, C) native dtype (bf16/f32)
    tb = x_nat.shape[0]

    # Row max in the native dtype (exact; half the vregs for bf16 on v6e/v7x),
    # widen to f32 only for the subtract/exp/sum chain.
    row_max = jnp.max(x_nat, axis=-1, keepdims=True).astype(jnp.float32)   # (TB, 1)
    x = x_nat.astype(jnp.float32)
    ex = jnp.exp(x - row_max)                                              # EUP
    lse = jnp.log(jnp.sum(ex, axis=-1, keepdims=True)) + row_max           # (TB, 1)

    mw = mw_ref[...]     # (TB,1) f32: mask * weight[target]
    mwt = mwt_ref[...]   # (TB,1) f32: mask * weight[target] * logits[row, target[row]]

    # Keep only in-bounds, masked-in rows.  jnp.where (not multiply) so garbage in
    # trailing-tile padding or inf/nan logits in dropped rows never contaminate the
    # sums, matching masked_select-then-CE semantics.  Do NOT simplify to mw*nll.
    gblk = p * inner_steps + i
    row = lax.broadcasted_iota(jnp.int32, (tb, 1), 0) + gblk * block_rows
    keep = jnp.logical_and(row < total_rows, mw != 0.0)

    # Per-row weighted nll: mw*lse - mw*tgt_logit.  Accumulate into VMEM scratch
    # (pure VALU adds); defer the cross-sublane reduce to the final step.
    numer_acc[...] += jnp.where(keep, mw * lse - mwt, 0.0)
    denom_acc[...] += jnp.where(keep, mw, 0.0)

    @pl.when(i == inner_steps - 1)
    def _():
        numer_ref[...] = jnp.broadcast_to(jnp.sum(numer_acc[...]), numer_ref.shape)
        denom_ref[...] = jnp.broadcast_to(jnp.sum(denom_acc[...]), denom_ref.shape)


def _per_row_vmem_bytes(c, itemsize):
    # Effective per-row VMEM cost:
    #   2 * C * itemsize   double-buffered native-dtype logits tile
    #   ~10 * C            f32 widened copy + exp/where temporaries (the row
    #                      reductions break elementwise fusion, so they materialize)
    #   ~3 KiB             lane-padded (TB,1) operands (mw, mwt; 2 buffers each)
    #                      plus the two (TB,1) f32 scratch accumulators
    return c * (2 * itemsize + 10) + 3 * 1024


def _choose_block_rows(b, c, itemsize, tile_budget_bytes=24 * 1024 * 1024):
    """Size the batch tile by bytes (multi-MiB logits tiles, no fixed row cap)."""
    per_row = _per_row_vmem_bytes(c, itemsize)
    sub = max(8, 32 // itemsize)                  # packed-sublane multiple
    max_rows = max(sub, tile_budget_bytes // per_row)
    tb = min(b, max_rows)
    if tb < b:
        tb = max(sub, (tb // sub) * sub)          # keep (8,128)-legal tiles
    return int(tb)


def masked_cross_entropy_loss(logits, target, mask, weight, reduction='mean',
                              block_rows=None, num_parallel=2, check_mask=False):
    """Pallas implementation of MaskedCrossEntropyLoss.forward."""
    b, c = logits.shape

    if check_mask:
        # Mirrors the PyTorch ValueError.  Forces a device->host sync and is not
        # jittable, so it is opt-in and kept off the hot path.
        if not bool(jnp.any(mask != 0)):
            raise ValueError('Mask in MaskedCrossEntropyLoss is all zeros.')

    mask_b = (mask != 0)
    target_i = target.astype(jnp.int32)
    w_row = weight.astype(jnp.float32)[target_i]                         # (B,)
    mw = jnp.where(mask_b, w_row, 0.0).astype(jnp.float32)               # (B,)

    # Hoist the target-logit gather out of the kernel (removes iota/cmp/select/sum
    # from the per-element VALU chain).  Guarded with where so inf/NaN logits in
    # masked-out rows cannot poison the operand.
    # TODO(synk): for very large B verify the XLA row-gather cost; a tiny side
    #             kernel could produce this operand instead.
    tgt = jnp.take_along_axis(logits, target_i[:, None], axis=-1)[:, 0]
    mwt = jnp.where(mask_b, mw * tgt.astype(jnp.float32), 0.0)           # (B,)

    itemsize = jnp.dtype(logits.dtype).itemsize
    tb = block_rows if block_rows is not None else _choose_block_rows(b, c, itemsize)
    num_blocks = pl.cdiv(b, tb)

    # Shard the block range across TensorCores (v7x: 2 TCs).  Extra shards on
    # 1-TC chips are just additional sequential outer iterations.
    num_par = max(1, min(int(num_parallel), num_blocks))
    inner = pl.cdiv(num_blocks, num_par)
    last_blk = num_blocks - 1

    # Explicit scoped-VMEM request sized from the real footprint (+ headroom),
    # capped well under per-core physical VMEM on every generation (64 MiB on v7x).
    est = _per_row_vmem_bytes(c, itemsize) * tb
    vmem_limit = int(min(56 * 2**20, max(32 * 2**20, est + 8 * 2**20)))

    kernel = functools.partial(_masked_ce_kernel, total_rows=b, block_rows=tb,
                               inner_steps=inner)

    def _blk(p, i):
        # The last parallel shard may run past num_blocks; clamp the DMA to the
        # final block -- the kernel's row-bound guard zeroes those contributions.
        return (jnp.minimum(p * inner + i, last_blk), 0)

    numer, denom = pl.pallas_call(
        kernel,
        grid=(num_par, inner),
        in_specs=[
            pl.BlockSpec((tb, c), _blk),    # logits, streamed in native dtype
            pl.BlockSpec((tb, 1), _blk),    # mask * weight[target]
            pl.BlockSpec((tb, 1), _blk),    # mask * weight[target] * logit[target]
        ],
        out_specs=[
            pl.BlockSpec((1, 8, 128), lambda p, i: (p, 0, 0)),   # per-shard numer
            pl.BlockSpec((1, 8, 128), lambda p, i: (p, 0, 0)),   # per-shard denom
        ],
        out_shape=[
            jax.ShapeDtypeStruct((num_par, 8, 128), jnp.float32),
            jax.ShapeDtypeStruct((num_par, 8, 128), jnp.float32),
        ],
        scratch_shapes=[
            pltpu.VMEM((tb, 1), jnp.float32),   # running numer partials
            pltpu.VMEM((tb, 1), jnp.float32),   # running denom partials
        ],
        compiler_params=pltpu.CompilerParams(
            dimension_semantics=("parallel", "arbitrary"),
            vmem_limit_bytes=vmem_limit),
    )(logits, mw.reshape(b, 1), mwt.reshape(b, 1))

    numer_total = jnp.sum(numer[:, 0, 0])
    denom_total = jnp.sum(denom[:, 0, 0])

    if reduction == 'mean':
        return numer_total / denom_total
    elif reduction == 'sum':
        return numer_total
    else:
        # TODO(synk): reduction='none' would require returning per-(masked)-row losses.
        raise NotImplementedError("Only 'mean' and 'sum' reductions are implemented.")


def _reference(logits, target, mask, weight):
    """Pure-JAX reference matching F.cross_entropy(weight=..., reduction='mean')."""
    m = (mask != 0)
    logits = logits.astype(jnp.float32)
    lse = jax.nn.logsumexp(logits, axis=-1)
    tgt = jnp.take_along_axis(logits, target[:, None], axis=-1)[:, 0]
    nll = lse - tgt
    w = weight[target]
    mf = m.astype(jnp.float32)
    return jnp.sum(mf * w * nll) / jnp.sum(mf * w)


if __name__ == "__main__":
    key = jax.random.PRNGKey(0)
    k1, k2, k3, k4 = jax.random.split(key, 4)

    B, C = 20, 32  # small shapes; B chosen non-multiple-of-8 to exercise tiling

    logits = jax.random.normal(k1, (B, C), dtype=jnp.float32)
    target = jax.random.randint(k2, (B,), 0, C, dtype=jnp.int32)
    mask = jax.random.bernoulli(k3, p=0.6, shape=(B,))
    mask = mask.at[0].set(True)   # guarantee at least one masked-in row
    weight = jax.random.uniform(k4, (C,), dtype=jnp.float32, minval=0.5, maxval=1.5)

    ref = _reference(logits, target, mask, weight)

    # 1) Default tile (single block for this small B; num_parallel collapses to 1).
    out = masked_cross_entropy_loss(logits, target, mask, weight, reduction='mean')
    out = jax.block_until_ready(out)
    assert jnp.allclose(out, ref, rtol=1e-5, atol=1e-5), (out, ref)

    # 2) Forced multi-block path: partial trailing tile + 2-way parallel shard with
    #    a clamped overhang step on the second shard.
    out_tiled = masked_cross_entropy_loss(logits, target, mask, weight,
                                          reduction='mean', block_rows=8)
    out_tiled = jax.block_until_ready(out_tiled)
    assert jnp.allclose(out_tiled, ref, rtol=1e-5, atol=1e-5), (out_tiled, ref)

    # 3) bf16 logits streamed directly; row-max in bf16, exp/sum widened to f32.
    logits_bf16 = logits.astype(jnp.bfloat16)
    out_bf16 = masked_cross_entropy_loss(logits_bf16, target, mask, weight,
                                         reduction='mean', block_rows=16)
    out_bf16 = jax.block_until_ready(out_bf16)
    ref_bf16 = _reference(logits_bf16, target, mask, weight)
    assert jnp.allclose(out_bf16, ref_bf16, rtol=2e-2, atol=2e-2), (out_bf16, ref_bf16)

    print("KERNEL_OK")
</pallas_src>

<mosaic_0001>
module attributes {stable_mosaic.version = 11 : i64} {
  func.func @_masked_ce_kernel(%arg0: i32, %arg1: i32, %arg2: memref<20x32xf32, #tpu.memory_space<vmem>>, %arg3: memref<20x1xf32, #tpu.memory_space<vmem>>, %arg4: memref<20x1xf32, #tpu.memory_space<vmem>>, %arg5: memref<1x8x128xf32, #tpu.memory_space<vmem>>, %arg6: memref<1x8x128xf32, #tpu.memory_space<vmem>>, %arg7: memref<20x1xf32, #tpu.memory_space<vmem>>, %arg8: memref<20x1xf32, #tpu.memory_space<vmem>>) attributes {dimension_semantics = [#tpu.dimension_semantics<parallel>, #tpu.dimension_semantics<arbitrary>], iteration_bounds = array<i64: 1, 1>, scalar_prefetch = 0 : i64, scratch_operands = 2 : i64, tpu.core_type = #tpu.core_type<tc>, window_params = [{transform_indices = @transform_0, window_bounds = array<i64: 20, 32>}, {transform_indices = @transform_1, window_bounds = array<i64: 20, 1>}, {transform_indices = @transform_2, window_bounds = array<i64: 20, 1>}, {transform_indices = @transform_3, window_bounds = array<i64: 1, 8, 128>}, {transform_indices = @transform_4, window_bounds = array<i64: 1, 8, 128>}]} {
    %c0_i32 = arith.constant 0 : i32
    %0 = arith.cmpi eq, %arg1, %c0_i32 : i32
    %1 = arith.extui %0 : i1 to i32
    %c0_i32_0 = arith.constant 0 : i32
    %2 = arith.cmpi ne, %1, %c0_i32_0 : i32
    scf.if %2 {
      %cst_21 = arith.constant 0.000000e+00 : f32
      %41 = vector.broadcast %cst_21 : f32 to vector<20x1xf32>
      %c0_22 = arith.constant 0 : index
      %c0_23 = arith.constant 0 : index
      %42 = vector.load %arg7[%c0_22, %c0_23] : memref<20x1xf32, #tpu.memory_space<vmem>>, vector<20x1xf32>
      tpu.vector_store %arg7[%c0_22, %c0_23], %41 {strides = array<i32>} : memref<20x1xf32, #tpu.memory_space<vmem>>, vector<20x1xf32>,
      %cst_24 = arith.constant 0.000000e+00 : f32
      %43 = vector.broadcast %cst_24 : f32 to vector<20x1xf32>
      %c0_25 = arith.constant 0 : index
      %c0_26 = arith.constant 0 : index
      %44 = vector.load %arg8[%c0_25, %c0_26] : memref<20x1xf32, #tpu.memory_space<vmem>>, vector<20x1xf32>
      tpu.vector_store %arg8[%c0_25, %c0_26], %43 {strides = array<i32>} : memref<20x1xf32, #tpu.memory_space<vmem>>, vector<20x1xf32>,
    } else {
    }
    %c0 = arith.constant 0 : index
    %c0_1 = arith.constant 0 : index
    %3 = vector.load %arg2[%c0, %c0_1] : memref<20x32xf32, #tpu.memory_space<vmem>>, vector<20x32xf32>
    %cst = arith.constant dense<0xFF800000> : vector<20xf32>
    %4 = vector.multi_reduction <maximumf>, %3, %cst [1] : vector<20x32xf32> to vector<20xf32>
    %5 = vector.shape_cast %4 : vector<20xf32> to vector<20x1xf32>
    %6 = vector.broadcast %5 : vector<20x1xf32> to vector<20x32xf32>
    %7 = arith.subf %3, %6 : vector<20x32xf32>
    %8 = math.exp %7 : vector<20x32xf32>
    %cst_2 = arith.constant dense<0.000000e+00> : vector<20xf32>
    %9 = vector.multi_reduction <add>, %8, %cst_2 [1] : vector<20x32xf32> to vector<20xf32>
    %10 = vector.shape_cast %9 : vector<20xf32> to vector<20x1xf32>
    %11 = math.log %10 : vector<20x1xf32>
    %12 = arith.addf %11, %5 : vector<20x1xf32>
    %c0_3 = arith.constant 0 : index
    %c0_4 = arith.constant 0 : index
    %13 = vector.load %arg3[%c0_3, %c0_4] : memref<20x1xf32, #tpu.memory_space<vmem>>, vector<20x1xf32>
    %c0_5 = arith.constant 0 : index
    %c0_6 = arith.constant 0 : index
    %14 = vector.load %arg4[%c0_5, %c0_6] : memref<20x1xf32, #tpu.memory_space<vmem>>, vector<20x1xf32>
    %c1_i32 = arith.constant 1 : i32
    %15 = arith.muli %arg0, %c1_i32 : i32
    %16 = arith.addi %15, %arg1 : i32
    %17 = tpu.iota {dimensions = array<i32: 0>} : vector<20x1xi32>
    %c20_i32 = arith.constant 20 : i32
    %18 = arith.muli %16, %c20_i32 : i32
    %19 = vector.broadcast %18 : i32 to vector<20x1xi32>
    %20 = arith.addi %17, %19 : vector<20x1xi32>
    %c20_i32_7 = arith.constant 20 : i32
    %21 = vector.broadcast %c20_i32_7 : i32 to vector<20x1xi32>
    %22 = arith.cmpi slt, %20, %21 : vector<20x1xi32>
    %cst_8 = arith.constant 0.000000e+00 : f32
    %23 = vector.broadcast %cst_8 : f32 to vector<20x1xf32>
    %24 = arith.cmpf one, %13, %23 : vector<20x1xf32>
    %25 = arith.andi %22, %24 : vector<20x1xi1>
    %c0_9 = arith.constant 0 : index
    %c0_10 = arith.constant 0 : index
    %26 = vector.load %arg7[%c0_9, %c0_10] : memref<20x1xf32, #tpu.memory_space<vmem>>, vector<20x1xf32>
    %27 = arith.mulf %13, %12 : vector<20x1xf32>
    %28 = arith.subf %27, %14 : vector<20x1xf32>
    %cst_11 = arith.constant 0.000000e+00 : f32
    %29 = vector.broadcast %cst_11 : f32 to vector<20x1xf32>
    %30 = arith.select %25, %28, %29 : vector<20x1xi1>, vector<20x1xf32>
    %31 = arith.addf %26, %30 : vector<20x1xf32>
    %c0_12 = arith.constant 0 : index
    %c0_13 = arith.constant 0 : index
    %32 = vector.load %arg7[%c0_12, %c0_13] : memref<20x1xf32, #tpu.memory_space<vmem>>, vector<20x1xf32>
    tpu.vector_store %arg7[%c0_12, %c0_13], %31 {strides = array<i32>} : memref<20x1xf32, #tpu.memory_space<vmem>>, vector<20x1xf32>,
    %c0_14 = arith.constant 0 : index
    %c0_15 = arith.constant 0 : index
    %33 = vector.load %arg8[%c0_14, %c0_15] : memref<20x1xf32, #tpu.memory_space<vmem>>, vector<20x1xf32>
    %cst_16 = arith.constant 0.000000e+00 : f32
    %34 = vector.broadcast %cst_16 : f32 to vector<20x1xf32>
    %35 = arith.select %25, %13, %34 : vector<20x1xi1>, vector<20x1xf32>
    %36 = arith.addf %33, %35 : vector<20x1xf32>
    %c0_17 = arith.constant 0 : index
    %c0_18 = arith.constant 0 : index
    %37 = vector.load %arg8[%c0_17, %c0_18] : memref<20x1xf32, #tpu.memory_space<vmem>>, vector<20x1xf32>
    tpu.vector_store %arg8[%c0_17, %c0_18], %36 {strides = array<i32>} : memref<20x1xf32, #tpu.memory_space<vmem>>, vector<20x1xf32>,
    %c0_i32_19 = arith.constant 0 : i32
    %38 = arith.cmpi eq, %arg1, %c0_i32_19 : i32
    %39 = arith.extui %38 : i1 to i32
    %c0_i32_20 = arith.constant 0 : i32
    %40 = arith.cmpi ne, %39, %c0_i32_20 : i32
    scf.if %40 {
      %c0_21 = arith.constant 0 : index
      %c0_22 = arith.constant 0 : index
      %41 = vector.load %arg7[%c0_21, %c0_22] : memref<20x1xf32, #tpu.memory_space<vmem>>, vector<20x1xf32>
      %42 = vector.shape_cast %41 : vector<20x1xf32> to vector<1x20x1xf32>
      %cst_23 = arith.constant dense<0.000000e+00> : vector<1xf32>
      %43 = vector.multi_reduction <add>, %42, %cst_23 [1, 2] : vector<1x20x1xf32> to vector<1xf32>
      %44 = vector.shape_cast %43 : vector<1xf32> to vector<1x1x1xf32>
      %45 = vector.extract %44[0, 0, 0] : f32 from vector<1x1x1xf32>
      %46 = vector.broadcast %45 : f32 to vector<1x8x128xf32>
      %c0_24 = arith.constant 0 : index
      %c0_25 = arith.constant 0 : index
      %c0_26 = arith.constant 0 : index
      %47 = vector.load %arg5[%c0_24, %c0_25, %c0_26] : memref<1x8x128xf32, #tpu.memory_space<vmem>>, vector<1x8x128xf32>
      tpu.vector_store %arg5[%c0_24, %c0_25, %c0_26], %46 {strides = array<i32>} : memref<1x8x128xf32, #tpu.memory_space<vmem>>, vector<1x8x128xf32>,
      %c0_27 = arith.constant 0 : index
      %c0_28 = arith.constant 0 : index
      %48 = vector.load %arg8[%c0_27, %c0_28] : memref<20x1xf32, #tpu.memory_space<vmem>>, vector<20x1xf32>
      %49 = vector.shape_cast %48 : vector<20x1xf32> to vector<1x20x1xf32>
      %cst_29 = arith.constant dense<0.000000e+00> : vector<1xf32>
      %50 = vector.multi_reduction <add>, %49, %cst_29 [1, 2] : vector<1x20x1xf32> to vector<1xf32>
      %51 = vector.shape_cast %50 : vector<1xf32> to vector<1x1x1xf32>
      %52 = vector.extract %51[0, 0, 0] : f32 from vector<1x1x1xf32>
      %53 = vector.broadcast %52 : f32 to vector<1x8x128xf32>
      %c0_30 = arith.constant 0 : index
      %c0_31 = arith.constant 0 : index
      %c0_32 = arith.constant 0 : index
      %54 = vector.load %arg6[%c0_30, %c0_31, %c0_32] : memref<1x8x128xf32, #tpu.memory_space<vmem>>, vector<1x8x128xf32>
      tpu.vector_store %arg6[%c0_30, %c0_31, %c0_32], %53 {strides = array<i32>} : memref<1x8x128xf32, #tpu.memory_space<vmem>>, vector<1x8x128xf32>,
    } else {
    }
    return
  }
  func.func @transform_0(%arg0: i32, %arg1: i32) -> (i32, i32) {
    %c1_i32 = arith.constant 1 : i32
    %0 = arith.muli %arg0, %c1_i32 : i32
    %1 = arith.addi %0, %arg1 : i32
    %c0_i32 = arith.constant 0 : i32
    %2 = arith.minsi %1, %c0_i32 : i32
    %c0_i32_0 = arith.constant 0 : i32
    %c0_i32_1 = arith.constant 0 : i32
    return %2, %c0_i32_0 : i32, i32
  }
  func.func @transform_1(%arg0: i32, %arg1: i32) -> (i32, i32) {
    %c1_i32 = arith.constant 1 : i32
    %0 = arith.muli %arg0, %c1_i32 : i32
    %1 = arith.addi %0, %arg1 : i32
    %c0_i32 = arith.constant 0 : i32
    %2 = arith.minsi %1, %c0_i32 : i32
    %c0_i32_0 = arith.constant 0 : i32
    %c0_i32_1 = arith.constant 0 : i32
    return %2, %c0_i32_0 : i32, i32
  }
  func.func @transform_2(%arg0: i32, %arg1: i32) -> (i32, i32) {
    %c1_i32 = arith.constant 1 : i32
    %0 = arith.muli %arg0, %c1_i32 : i32
    %1 = arith.addi %0, %arg1 : i32
    %c0_i32 = arith.constant 0 : i32
    %2 = arith.minsi %1, %c0_i32 : i32
    %c0_i32_0 = arith.constant 0 : i32
    %c0_i32_1 = arith.constant 0 : i32
    return %2, %c0_i32_0 : i32, i32
  }
  func.func @transform_3(%arg0: i32, %arg1: i32) -> (i32, i32, i32) {
    %c0_i32 = arith.constant 0 : i32
    %c0_i32_0 = arith.constant 0 : i32
    %c0_i32_1 = arith.constant 0 : i32
    return %arg0, %c0_i32, %c0_i32_0 : i32, i32, i32
  }
  func.func @transform_4(%arg0: i32, %arg1: i32) -> (i32, i32, i32) {
    %c0_i32 = arith.constant 0 : i32
    %c0_i32_0 = arith.constant 0 : i32
    %c0_i32_1 = arith.constant 0 : i32
    return %arg0, %c0_i32, %c0_i32_0 : i32, i32, i32
  }
}

</mosaic_0001>

<bundles_post_ra>
// kernel: tpu_custom_call.1
= control target key start
LH: loop header
LB: loop body
LE: loop exit
PB: predicated region body
PF: predicated region fallthrough
CT: control target
= control target key end

     0   :  { %10 = vsyncpa [#allocation5], 0  ;;  %vm129_vm0 = vcmask 261120   ;;  %vm136_vm1 = vcmask 257024   ;;  %s483_s0 = inlined_call_operand.vmem [shape: f32[20,32], index: 0, kind: input, shape index: {}]   ;;  %s484_s1 = inlined_call_operand.vmem [shape: f32[20,1], index: 1, kind: input, shape index: {}]   ;;  %s485_s2 = inlined_call_operand.vmem [shape: f32[20,1], index: 2, kind: input, shape index: {}]   ;;  %s486_s3 = inlined_call_operand.hbm [shape: f32[1,8,128], index: 3, kind: output, shape index: {0}]   ;;  %s487_s4 = inlined_call_operand.hbm [shape: f32[1,8,128], index: 4, kind: output, shape index: {1}]  }
   0x1   :  { %v126_v0 = vld [vmem:[%s483_s0] sm:$0xff]  ;;  %v128_v1 = vld [vmem:[%s483_s0 + $0x10] sm:$0xf]  ;;  %v127_v2 = vld [vmem:[%s483_s0 + $0x8] sm:$0xff] }
   0x2   :  { %v130_v3 = vsel %vm129_vm0, %v126_v0, -inf  ;;  %v137_v4 = vsel %vm136_vm1, %v128_v1, -inf }
   0x3   :  { %11 = vsyncpa [#allocation7], 0  ;;  %131 = vmax.xlane.f32.xlu0 %v130_v3  ;;  %138 = vmax.xlane.f32.xlu1 %v137_v4  ;;  %v133_v5 = vsel %vm129_vm0, %v127_v2, -inf  ;;  %vm118_vm2 = vcmask 7168   ;;  %v374_v21 = vmov 0.0   ;;  %v167_v22 = vld [vmem:[%s484_s1] sm:$0xff]  ;;  %v174_v23 = vlaneseq }
   0x4   :  { %119 = vst.msk [vmem:[#allocation2] sm:$0xff] %vm118_vm2, %v374_v21  ;;  %123 = vst.msk [vmem:[#allocation3] sm:$0xff] %vm118_vm2, %v374_v21  ;;  %vm186_vm3 = vcmp.ne.f32.partialorder %v167_v22, 0.0  ;;  %vm121_vm4 = vcmask 3072   ;;  %v168_v27 = vld [vmem:[%s484_s1 + $0x8] sm:$0xff]  ;;  %v170_v53 = vld [vmem:[%s485_s2] sm:$0xff] }
   0x5   :  { %120 = vst.msk [vmem:[#allocation2 + $0x8] sm:$0xff] %vm118_vm2, %v374_v21  ;;  %124 = vst.msk [vmem:[#allocation3 + $0x8] sm:$0xff] %vm118_vm2, %v374_v21  ;;  %v175_v24 = vshrl.u32 %v174_v23, 7  ;;  %v215_v25 = vsel %vm186_vm3, %v167_v22, 0.0  ;;  %v169_v28 = vld [vmem:[%s484_s1 + $0x10] sm:$0xf] }
   0x6   :  { %122 = vst.msk [vmem:[#allocation2 + $0x10] sm:$0xf] %vm121_vm4, %v374_v21  ;;  %125 = vst.msk [vmem:[#allocation3 + $0x10] sm:$0xf] %vm121_vm4, %v374_v21  ;;  %vm187_vm5 = vcmp.ne.f32.partialorder %v168_v27, 0.0  ;;  %vm188_vm7 = vcmp.ne.f32.partialorder %v169_v28, 0.0 }
   0x7   :  { %134 = vmax.xlane.f32.xlu0 %v133_v5  ;;  %v177_v26 = vadd.s32 16, %v175_v24  ;;  %v216_v30 = vsel %vm187_vm5, %v168_v27, 0.0  ;;  %v172_v61 = vld [vmem:[%s485_s2 + $0x10] sm:$0xf]  ;;  %s376_s6 = smov [#allocation6]  }
   0x8   :  { %s281_s7 = sshll.u32 %s376_s6, 4  ;;  %s282_s7 = int_to_ptr.vmem [resolvable:$true] %s281_s7 }
   0x9   :  { %vm185_vm6 = vcmp.lt.s32.totalorder %v177_v26, 20 }
   0xa   :  { %vm443_vm8 = vmand %vm185_vm6, %vm188_vm7 }
   0xb   :  { %v212_v29 = vld [vmem:[#allocation3] sm:$0xff]  ;;  %v217_v34 = vsel %vm443_vm8, %v169_v28, 0.0  ;;  %v192_v58 = vld [vmem:[#allocation2] sm:$0xff] }
   0xc   :  { %v218_v31 = vadd.f32 %v215_v25, %v212_v29  ;;  %v213_v33 = vld [vmem:[#allocation3 + $0x8] sm:$0xff] }
   0xd   :  { %v219_v35 = vadd.f32 %v216_v30, %v213_v33  ;;  %v214_v36 = vld [vmem:[#allocation3 + $0x10] sm:$0xf]  ;;  %v194_v5 = vld [vmem:[#allocation2 + $0x10] sm:$0xf] }
   0xe   :  { %221 = vst.msk [vmem:[#allocation3] sm:$0xff] %vm118_vm2, %v218_v31  ;;  %v220_v37 = vadd.f32 %v217_v34, %v214_v36 }
   0xf   :  { %222 = vst.msk [vmem:[#allocation3 + $0x8] sm:$0xff] %vm118_vm2, %v219_v35 }
  0x10   :  { %223 = vst.msk [vmem:[#allocation3 + $0x10] sm:$0xf] %vm121_vm4, %v220_v37 }
  0x15   :  { %v246_v38 = vld [vmem:[#allocation3] sm:$0xff] }
  0x16   :  { %v247_v39 = vld [vmem:[#allocation3 + $0x8] sm:$0xff]  ;;  %v249_v40 = vsel %vm118_vm2, %v246_v38, 0.0 }
  0x17   :  { %v250_v41 = vsel %vm118_vm2, %v247_v39, 0.0  ;;  %v248_v42 = vld [vmem:[#allocation3 + $0x10] sm:$0xf] }
  0x18   :  { %v251_v43 = vadd.f32 %v250_v41, %v249_v40  ;;  %v252_v44 = vsel %vm121_vm4, %v248_v42, 0.0 }
  0x1a   :  { %v253_v45 = vadd.f32 %v252_v44, %v251_v43 }
  0x8c   :  { %v414_v6 = vpop.xlane.xlu0 %131  ;;  %v416_v7 = vpop.xlane.xlu1 %138 }
  0x8d   :  { %v140_v8 = vsub.f32 %v126_v0, %v414_v6  ;;  %v142_v9 = vsub.f32 %v128_v1, %v416_v7  ;;  %v171_v1 = vld [vmem:[%s485_s2 + $0x8] sm:$0xff]  ;;  %s375_s2 = smov [#allocation4]  }
  0x8e   :  { %s271_s5 = sshll.u32 %s375_s2, 4  ;;  %s272_s5 = int_to_ptr.vmem [resolvable:$true] %s271_s5 }
  0x8f   :  { %v143_v10 = vmul.f32 1.442695, %v140_v8  ;;  %v147_v11 = vmul.f32 1.442695, %v142_v9  ;;  %s330_s10 = scalar_lea.vmem %s272_s5, 128  ;;  %p335_p1 = scmp.lt.s32.totalorder %s272_s5, %s272_s5 }
  0x90   :  { %v420_v12 = vpop.xlane.xlu0 %134  ;;  %p331_p0 = scmp.ne.s32.totalorder %s272_s5, %s330_s10  ;;  %p336_p2 = scmp.lt.s32.totalorder %s330_s10, %s330_s10 }
  0x91   :  { %318 = vpow2.f32 %v143_v10  ;;  %v141_v13 = vsub.f32 %v127_v2, %v420_v12 }
  0x92   :  { %320 = vpow2.f32 %v147_v11  ;;  %p337_p3 = por %p336_p2, %p335_p1 }
  0x93   :  { %v145_v14 = vmul.f32 1.442695, %v141_v13 }
  0x94   :  { %p338_p4 = pnand %p337_p3, %p331_p0 }
  0x95   :  { %322 = vpow2.f32 %v145_v14 }
  0x9e   :  { %v319_v15 = vpop.eup %318 }
  0x9f   :  { %v321_v16 = vpop.eup %320  ;;  %v149_v17 = vsel %vm129_vm0, %v319_v15, 0.0 }
  0xa0   :  { %150 = vadd.xlane.f32.xlu1 %v149_v17  ;;  %v155_v18 = vsel %vm136_vm1, %v321_v16, 0.0 }
  0xa2   :  { %v323_v19 = vpop.eup %322 }
  0xa3   :  { %v152_v20 = vsel %vm129_vm0, %v323_v19, 0.0 }
  0xa4   :  { %156 = vadd.xlane.f32.xlu1 %v155_v18  ;;  %153 = vadd.xlane.f32.xlu0 %v152_v20 }
  0xa8   :  { %254 = vadd.xlane.f32.xlu1 %v253_v45 }
 0x129   :  { %v151_v46 = vpop.xlane.xlu1 %150 }
 0x12a   :  { %324 = vlog2.f32 %v151_v46 }
 0x12d   :  { %v157_v47 = vpop.xlane.xlu1 %156  ;;  %v154_v48 = vpop.xlane.xlu0 %153 }
 0x12e   :  { %326 = vlog2.f32 %v157_v47 }
 0x12f   :  { %328 = vlog2.f32 %v154_v48 }
 0x131   :  { %v255_v20 = vpop.xlane.xlu1 %254 }
 0x132   :  { %v256_v21 = vrot.slane %v255_v20, 4 }
 0x137   :  { %v325_v49 = vpop.eup %324 }
 0x138   :  { %v159_v50 = vmul.f32 0.6931472, %v325_v49 }
 0x13a   :  { %v164_v51 = vadd.f32 %v159_v50, %v414_v6  ;;  %v193_v6 = vld [vmem:[#allocation2 + $0x8] sm:$0xff] }
 0x13b   :  { %v327_v52 = vpop.eup %326 }
 0x13c   :  { %v329_v54 = vpop.eup %328  ;;  %v195_v55 = vmul.f32 %v167_v22, %v164_v51  ;;  %v163_v56 = vmul.f32 0.6931472, %v327_v52  ;;  %v257_v22 = vadd.f32 %v256_v21, %v255_v20 }
 0x13d   :  { %v161_v57 = vmul.f32 0.6931472, %v329_v54 }
 0x13e   :  { %v198_v59 = vsub.f32 %v195_v55, %v170_v53  ;;  %v166_v60 = vadd.f32 %v163_v56, %v416_v7  ;;  %v258_v23 = vrot.slane %v257_v22, 2 }
 0x13f   :  { %v165_v62 = vadd.f32 %v161_v57, %v420_v12 }
 0x140   :  { %v201_v63 = vsel %vm186_vm3, %v198_v59, 0.0  ;;  %v197_v0 = vmul.f32 %v169_v28, %v166_v60 }
 0x141   :  { %v204_v2 = vadd.f32 %v201_v63, %v192_v58  ;;  %v196_v3 = vmul.f32 %v168_v27, %v165_v62  ;;  %v259_v27 = vadd.f32 %v258_v23, %v257_v22 }
 0x142   :  { %v200_v4 = vsub.f32 %v197_v0, %v172_v61 }
 0x143   :  { %208 = vst.msk [vmem:[#allocation2] sm:$0xff] %vm118_vm2, %v204_v2  ;;  %v199_v7 = vsub.f32 %v196_v3, %v171_v1  ;;  %v260_v30 = vrot.slane %v259_v27, 1 }
 0x144   :  { %v203_v8 = vsel %vm443_vm8, %v200_v4, 0.0 }
 0x145   :  { %v202_v9 = vsel %vm187_vm5, %v199_v7, 0.0  ;;  %v206_v10 = vadd.f32 %v203_v8, %v194_v5  ;;  %v261_v33 = vadd.f32 %v260_v30, %v259_v27 }
 0x146   :  { %v205_v11 = vadd.f32 %v202_v9, %v193_v6 }
 0x147   :  { %211 = vst.msk [vmem:[#allocation2 + $0x10] sm:$0xf] %vm121_vm4, %v206_v10 }
 0x148   :  { %209 = vst.msk [vmem:[#allocation2 + $0x8] sm:$0xff] %vm118_vm2, %v205_v11 }
 0x14a   :  { %v227_v12 = vld [vmem:[#allocation2] sm:$0xff] }
 0x14b   :  { %v230_v15 = vsel %vm118_vm2, %v227_v12, 0.0 }
 0x14e   :  { %v229_v14 = vld [vmem:[#allocation2 + $0x10] sm:$0xf] }
 0x14f   :  { %v228_v13 = vld [vmem:[#allocation2 + $0x8] sm:$0xff]  ;;  %v233_v18 = vsel %vm121_vm4, %v229_v14, 0.0 }
 0x150   :  { %v231_v16 = vsel %vm118_vm2, %v228_v13, 0.0 }
 0x151   :  { %v232_v17 = vadd.f32 %v231_v16, %v230_v15 }
 0x153   :  { %v234_v19 = vadd.f32 %v233_v18, %v232_v17 }
 0x155   :  { %235 = vadd.xlane.f32.xlu0 %v234_v19 }
 0x1de   :  { %v236_v24 = vpop.xlane.xlu0 %235 }
 0x1df   :  { %v237_v25 = vrot.slane %v236_v24, 4 }
 0x1e1   :  { %v238_v26 = vadd.f32 %v237_v25, %v236_v24 }
 0x1e3   :  { %v239_v28 = vrot.slane %v238_v26, 2 }
 0x1e5   :  { %v240_v29 = vadd.f32 %v239_v28, %v238_v26 }
 0x1e7   :  { %v241_v31 = vrot.slane %v240_v29, 1 }
 0x1e9   :  { %v242_v32 = vadd.f32 %v241_v31, %v240_v29 }
 0x1eb   :  { %311 = vpush %v242_v32 }
 0x1ec   :  { %313 = vpush %v261_v33 }
 0x21c   :  { %s312_s8 = spop %311 }
 0x21d   :  { %v244_v34 = vstv %s312_s8  ;;  %s314_s9 = spop %313 }
 0x21e   :  { %245 = vst [vmem:[#allocation4] sm:$0xff] %v244_v34  ;;  %v263_v35 = vstv %s314_s9 }
 0x21f   :  { %264 = vst [vmem:[#allocation6] sm:$0xff] %v263_v35 }
 0x220   :  { %341 = shalt.err (!%p338_p4)
}
 0x221   :  { %274 = dma.vmem_to_hbm [thread:$0]  %s272_s5, 128, %s486_s3, [#allocation5]  }
 0x222   :  { %s350_s13 = scalar_lea.vmem %s282_s7, 128  ;;  %p355_p6 = scmp.lt.s32.totalorder %s282_s7, %s282_s7 }
 0x223   :  { %p351_p5 = scmp.ne.s32.totalorder %s282_s7, %s350_s13  ;;  %p356_p7 = scmp.lt.s32.totalorder %s350_s13, %s350_s13 }
 0x225   :  { %p357_p8 = por %p356_p7, %p355_p6 }
 0x227   :  { %p358_p9 = pnand %p357_p8, %p351_p5 }
 0x229   :  { %361 = shalt.err (!%p358_p9)
}
 0x22a   :  { %284 = dma.vmem_to_hbm [thread:$0]  %s282_s7, 128, %s487_s4, [#allocation7]  }
 0x22b   :  { %370 = dma.done.wait [#allocation5], 128  }
 0x22c   :  { %371 = vsyncadd [#allocation5], 4294967168 }
 0x22d   :  { %372 = dma.done.wait [#allocation7], 128  }
 0x22e   :  { %373 = vsyncadd [#allocation7], 4294967168 }
 0x22f   :  { %291 = vsyncpa [#allocation5], 1 }
 0x230   :  { %292 = vsyncpa [#allocation7], 1 }

</bundles_post_ra>
